<compile_context>
chip_gen: v6e
topology: v6e:2x2x1
jax: 0.10.0
libtpu: 0.0.40
codegen_flags: <defaults>
</compile_context>

<pallas_src>
import jax
import jax.numpy as jnp
from jax.experimental import pallas as pl
from jax.experimental.pallas import tpu as pltpu

_LANE = 128
_SUBLANE = 8
_TARGET_TILE_BYTES = 2 * 1024 * 1024  # ~2 MiB per input tile


def _normalize_kernel(mean_ref, inv_std_ref, x_ref, o_ref):
    # mean_ref / inv_std_ref: (C,) float32 in SMEM (scalar-prefetched)
    # x_ref / o_ref: (TR, 128) VMEM tile for the current (n, c, r) grid point
    c = pl.program_id(1)
    m = mean_ref[c]
    inv = inv_std_ref[c]
    xv = x_ref[...].astype(jnp.float32)
    o_ref[...] = ((xv - m) * inv).astype(o_ref.dtype)


def normalize(x, mean, std):
    """x: (N, C, H, W); mean, std: (C,). Returns (x - mean_c) / std_c in x.dtype."""
    N, C, H, W = x.shape
    S = H * W
    orig_dtype = x.dtype

    # Per-channel constants stay in float32 (SMEM scalars are 32-bit anyway);
    # precomputing 1/std on the tiny (C,) vector is cheap and avoids a vector
    # divide on the big tensor.
    mean32 = jnp.asarray(mean, dtype=jnp.float32).reshape(C)
    inv_std32 = 1.0 / jnp.asarray(std, dtype=jnp.float32).reshape(C)

    # --- choose spatial tiling -------------------------------------------
    itemsize = jnp.dtype(orig_dtype).itemsize
    tile_elems = max(_SUBLANE * _LANE, _TARGET_TILE_BYTES // itemsize)
    rows_target = max(_SUBLANE, (tile_elems // _LANE) // _SUBLANE * _SUBLANE)

    R = -(-S // _LANE)  # rows of 128 lanes needed to hold H*W elements
    if R <= rows_target:
        TR = R          # one full-extent block per (n, c) -> always legal
        R_pad = R
    else:
        TR = rows_target                 # multiple of 8 sublanes, ~2 MiB
        R_pad = -(-R // TR) * TR         # pad so the spatial grid divides evenly
    S_pad = R_pad * _LANE

    # --- lane-dense relayout ----------------------------------------------
    xf = x.reshape(N, C, S)
    if S_pad != S:
        xf = jnp.pad(xf, ((0, 0), (0, 0), (0, S_pad - S)))
    xr = xf.reshape(N, C, R_pad, _LANE)

    grid = (N, C, R_pad // TR)

    grid_spec = pltpu.PrefetchScalarGridSpec(
        num_scalar_prefetch=2,  # mean, inv_std -> SMEM
        grid=grid,
        in_specs=[
            pl.BlockSpec((None, None, TR, _LANE),
                         lambda n, c, r, *_: (n, c, r, 0)),
        ],
        out_specs=pl.BlockSpec((None, None, TR, _LANE),
                               lambda n, c, r, *_: (n, c, r, 0)),
    )

    out = pl.pallas_call(
        _normalize_kernel,
        out_shape=jax.ShapeDtypeStruct((N, C, R_pad, _LANE), orig_dtype),
        grid_spec=grid_spec,
        compiler_params=pltpu.CompilerParams(
            dimension_semantics=("parallel", "parallel", "parallel"),
            vmem_limit_bytes=32 * 1024 * 1024,
        ),
    )(mean32, inv_std32, xr)

    out = out.reshape(N, C, S_pad)
    if S_pad != S:
        out = out[:, :, :S]
    return out.reshape(N, C, H, W)


if __name__ == "__main__":
    key = jax.random.PRNGKey(0)
    N, C, H, W = 2, 4, 16, 16

    x = jax.random.normal(key, (N, C, H, W), dtype=jnp.float32)
    # Deterministic per-channel mean/std (the module's __init__ just stores
    # whatever constants it is given).
    mean = jnp.array([0.1, 0.2, 0.3, 0.4], dtype=jnp.float32)
    std = jnp.array([0.5, 0.6, 0.7, 0.8], dtype=jnp.float32)

    out = normalize(x, mean, std)
    jax.block_until_ready(out)

    # Reference check against plain-JAX broadcasting semantics (same as torch).
    ref = (x - mean[None, :, None, None]) / std[None, :, None, None]
    assert out.shape == ref.shape and out.dtype == ref.dtype
    assert jnp.allclose(out, ref, rtol=1e-5, atol=1e-6)

    print("KERNEL_OK")
</pallas_src>

<mosaic_0001>
module attributes {stable_mosaic.version = 11 : i64} {
  func.func @_normalize_kernel(%arg0: i32, %arg1: i32, %arg2: i32, %arg3: memref<4xf32, #tpu.memory_space<smem>>, %arg4: memref<4xf32, #tpu.memory_space<smem>>, %arg5: memref<1x1x2x128xf32, #tpu.memory_space<vmem>>, %arg6: memref<1x1x2x128xf32, #tpu.memory_space<vmem>>) attributes {dimension_semantics = [#tpu.dimension_semantics<parallel>, #tpu.dimension_semantics<parallel>, #tpu.dimension_semantics<parallel>], iteration_bounds = array<i64: 2, 4, 1>, scalar_prefetch = 2 : i64, scratch_operands = 0 : i64, tpu.core_type = #tpu.core_type<tc>, window_params = [{transform_indices = @transform_0, window_bounds = array<i64: 1, 1, 2, 128>}, {transform_indices = @transform_1, window_bounds = array<i64: 1, 1, 2, 128>}]} {
    %0 = arith.index_cast %arg1 : i32 to index
    %1 = memref.load %arg3[%0] : memref<4xf32, #tpu.memory_space<smem>>
    %2 = arith.index_cast %arg1 : i32 to index
    %3 = memref.load %arg4[%2] : memref<4xf32, #tpu.memory_space<smem>>
    %c0 = arith.constant 0 : index
    %c0_0 = arith.constant 0 : index
    %c0_1 = arith.constant 0 : index
    %c0_2 = arith.constant 0 : index
    %4 = vector.load %arg5[%c0, %c0_0, %c0_1, %c0_2] : memref<1x1x2x128xf32, #tpu.memory_space<vmem>>, vector<1x1x2x128xf32>
    %5 = vector.shape_cast %4 : vector<1x1x2x128xf32> to vector<2x128xf32>
    %6 = vector.broadcast %1 : f32 to vector<2x128xf32>
    %7 = arith.subf %5, %6 : vector<2x128xf32>
    %8 = vector.broadcast %3 : f32 to vector<2x128xf32>
    %9 = arith.mulf %7, %8 : vector<2x128xf32>
    %c0_3 = arith.constant 0 : index
    %c0_4 = arith.constant 0 : index
    %c0_5 = arith.constant 0 : index
    %c0_6 = arith.constant 0 : index
    %10 = vector.load %arg6[%c0_3, %c0_4, %c0_5, %c0_6] : memref<1x1x2x128xf32, #tpu.memory_space<vmem>>, vector<1x1x2x128xf32>
    %11 = vector.shape_cast %10 : vector<1x1x2x128xf32> to vector<2x128xf32>
    %12 = vector.shape_cast %9 : vector<2x128xf32> to vector<1x1x2x128xf32>
    tpu.vector_store %arg6[%c0_3, %c0_4, %c0_5, %c0_6], %12 {strides = array<i32>} : memref<1x1x2x128xf32, #tpu.memory_space<vmem>>, vector<1x1x2x128xf32>,
    return
  }
  func.func @transform_0(%arg0: i32, %arg1: i32, %arg2: i32, %arg3: memref<4xf32, #tpu.memory_space<smem>>, %arg4: memref<4xf32, #tpu.memory_space<smem>>) -> (i32, i32, i32, i32) {
    %c0_i32 = arith.constant 0 : i32
    %c0_i32_0 = arith.constant 0 : i32
    return %arg0, %arg1, %arg2, %c0_i32 : i32, i32, i32, i32
  }
  func.func @transform_1(%arg0: i32, %arg1: i32, %arg2: i32, %arg3: memref<4xf32, #tpu.memory_space<smem>>, %arg4: memref<4xf32, #tpu.memory_space<smem>>) -> (i32, i32, i32, i32) {
    %c0_i32 = arith.constant 0 : i32
    %c0_i32_0 = arith.constant 0 : i32
    return %arg0, %arg1, %arg2, %c0_i32 : i32, i32, i32, i32
  }
}

</mosaic_0001>

<bundles_post_ra>
// kernel: tpu_custom_call.1
= control target key start
LH: loop header
LB: loop body
LE: loop exit
PB: predicated region body
PF: predicated region fallthrough
CT: control target
= control target key end

     0   :  { %s530_s12 = smov [#allocation3]   ;;  %s718_s0 = inlined_call_operand.hbm [shape: f32[4], index: 0, kind: input, shape index: {}]   ;;  %s719_s2 = inlined_call_operand.hbm [shape: f32[2,4,2,128], index: 2, kind: input, shape index: {}]   ;;  %s720_s3 = inlined_call_operand.hbm [shape: f32[2,4,2,128], index: 3, kind: output, shape index: {}]   ;;  %s721_s1 = inlined_call_operand.vmem [shape: f32[4], index: 1, kind: input, shape index: {}]  }
   0x1   :  { %9 = dma.hbm_to_smem %s718_s0, 16, %s530_s12, [#allocation2] }
   0x2   :  { %s10_s17 = sshll.u32 %s721_s1, 4  ;;  %s11_s17 = int_to_ptr.vmem [resolvable:$true] %s10_s17 }
   0x3   :  { %s390_s18 = scalar_lea.vmem %s11_s17, 16  ;;  %p395_p1 = scmp.lt.s32.totalorder %s11_s17, %s11_s17 }
   0x4   :  { %p391_p0 = scmp.ne.s32.totalorder %s11_s17, %s390_s18  ;;  %p396_p2 = scmp.lt.s32.totalorder %s390_s18, %s390_s18 }
   0x6   :  { %p397_p3 = por %p396_p2, %p395_p1 }
   0x8   :  { %p398_p4 = pnand %p397_p3, %p391_p0 }
   0xa   :  { %401 = shalt.err (!%p398_p4)  }
   0xb   :  { %s531_s19 = smov [#allocation4]  }
   0xc   :  { %13 = dma.vmem_to_smem %s11_s17, 16, %s531_s19, [#allocation2] }
   0xd   :  { %488 = dma.done.wait [#allocation2], 32 }
   0xe   :  { %489 = vsyncadd [#allocation2], 4294967264 }
   0xf   :  { %15 = sfence }
  0x10   :  { %16 = vsyncpa [#allocation6], 0 }
  0x11   :  { %18 = vsyncpa [#allocation6 + $0x1], 0 }
  0x12   :  { %19 = vsyncpa [#allocation7], 0 }
  0x13   :  { %21 = vsyncpa [#allocation7 + $0x1], 0  ;;  %s560_s0 = smov 0   ;;  %s562_s1 = smov 0  }
  0x14   :  { %s564_s20 = smov 0   ;;  %s566_s21 = smov 0  }
  0x15   :  { %s568_s22 = smov 0   ;;  %s570_s23 = smov 0  }
  0x16   :  { %s572_s24 = smov 0   ;;  %s574_s25 = smov 0  }
  0x17 LB: > { %s287_s26 = sadd.s32 4294967295, %s528_s25   ;;  %s288_s27 = sadd.s32 4294967294, %s528_s25   ;;  %s528_s25 = sphi %s574_s25, %s27_s25   ;;  %s524_s24 = sphi %s572_s24, %s734_s24   ;;  %s520_s23 = sphi %s570_s23, %s733_s23   ;;  %s516_s22 = sphi %s568_s22, %s732_s22   ;;  %s512_s21 = sphi %s566_s21, %s731_s21   ;;  %s508_s20 = sphi %s564_s20, %s730_s20   ;;  %s504_s1 = sphi %s562_s1, %s729_s1   ;;  %s500_s0 = sphi %s560_s0, %s728_s0  }
  0x18   : > { %s42_s28 = sadd.s32 1, %s520_s23  ;;  %s46_s29 = sadd.s32 1, %s524_s24 }
  0x19   : > { %p44_p5 = scmp.ge.s32.totalorder %s42_s28, 4  ;;  %s57_s30 = sadd.s32 1, %s508_s20 }
  0x1a   : > { %p64_p6 = scmp.ne.s32.totalorder %s508_s20, %s504_s1  ;;  %p65_p7 = scmp.eq.s32.totalorder %s528_s25, 0 }
  0x1b   : > { %s736_s28 = smov (%p44_p5, %s42_s28), 0  ;;  %s738_s29 = smov (!%p44_p5, %s46_s29), %s524_s24 }
  0x1c   : > { %s51_s4 = ssub.s32 %s520_s23, %s736_s28  ;;  %p613_p8 = por %p65_p7, %p64_p6 }
  0x1d   : > { %p48_p9 = scmp.ge.s32.totalorder %s738_s29, 2  ;;  %p70_p10 = scmp.ne.s32.totalorder %s504_s1, %s500_s0 }
  0x1e   : > { %p71_p11 = scmp.eq.s32.totalorder %s287_s26, 0  ;;  %p98_p12 = scmp.eq.s32.totalorder %s287_s26, 7 }
  0x1f   : > { %s740_s29 = smov (%p48_p9, %s738_s29), 0  ;;  %p104_p1 = scmp.eq.s32.totalorder %s288_s27, 7 }
  0x20   : > { %p621_p13 = por %p71_p11, %p70_p10  ;;  %p625_p0 = por %p98_p12, %p64_p6 }
  0x21   : > { %s50_s8 = ssub.s32 %s524_s24, %s740_s29  ;;  %p631_p3 = por %p104_p1, %p70_p10 }
  0x22   : > { %s52_s9 = sor.u32 %s51_s4, %s50_s8  ;;  %p314_p4 = scmp.lt.s32.totalorder %s528_s25, 8 }
  0x23   : > { %p55_p2 = scmp.eq.s32.totalorder %s52_s9, 0  ;;  %s124_s11 = sand.u32 1, %s508_s20  }
  0x24   : > { %s725_s10 = scalar_select %p631_p3, 1, 0 }
  0x25   : > { %s638_s12 = scalar_select %p55_p2, %s508_s20, %s57_s30  }
  0x26   : > { %s291_s13 = sshll.u32 %s124_s11, 1  ;;  %s292_s14 = sshll.u32 %s524_s24, 2 }
  0x27   : > { %s134_s15 = sadd.s32 %s520_s23, %s292_s14  ;;  %s128_s16 = scalar_lea.vmem [#allocation5], %s291_s13 }
  0x28   : > { %s138_s17 = sshll.u32 %s128_s16, 4  ;;  %s293_s18 = sshll.u32 %s134_s15, 5  ;;  %s139_s17 = int_to_ptr.vmem [resolvable:$true] %s138_s17 }
  0x29   : > { %s136_s27 = scalar_lea.hbm %s719_s2, %s293_s18  ;;  %p647_p5 = pnand %p314_p4, %p613_p8 }
  0x2a   : > { %p294_p6 = scmp.ge.s32.totalorder %s528_s25, 1  ;;  %p143_p7 = scmp.lt.s32.totalorder %s528_s25, 9 }
  0x2b   : > { %s125_s30 = scalar_lea.sflag [#allocation6], %s124_s11  ;;  %p404_p9 = pneg %p647_p5 }
  0x2c   : > { %s415_s8 = scalar_lea.vmem %s139_s17, 32  ;;  %s532_s9 = smov [#allocation5]  }
  0x2d   : > { %p416_p10 = scmp.ne.s32.totalorder %s139_s17, %s415_s8  ;;  %s420_s13 = sshll.u32 %s532_s9, 4  ;;  %s421_s13 = int_to_ptr.vmem [resolvable:$false] %s420_s13 }
  0x2e   : > { %s422_s14 = scalar_lea.vmem %s421_s13, 64  ;;  %p423_p1 = scmp.lt.s32.totalorder %s139_s17, %s421_s13 }
  0x2f   : > { %p418_p11 = pnand %p416_p10, %p404_p9  ;;  %p424_p2 = scmp.lt.s32.totalorder %s422_s14, %s415_s8 }
  0x31   : > { %p419_p12 = pneg %p418_p11  ;;  %p425_p8 = por %p424_p2, %p423_p1 }
  0x33   : > { %p426_p4 = pnand %p425_p8, %p419_p12 }
  0x35   : > { %429 = shalt.err (!%p426_p4)
}
  0x36   : > { %309 = dma.hbm_to_vmem [thread:$0]  (!%p647_p5), %s136_s27, 32, %s139_s17, %s125_s30  }
  0x37   : > { %p144_p3 = pnand %p294_p6, %p143_p7 }
  0x38   : > { %s662_s5 = sand.u32 (!%p144_p3), 1, %s504_s1  }
  0x39   : > { %147 = sbr.rel (%p144_p3) target bundleno = 89 (0x59), region = 24  ;;  %s295_s11 = sshll.u32 (!%p144_p3), %s662_s5, 1 }
  0x3a   : > { %s150_s15 = scalar_lea.sflag (!%p144_p3), [#allocation6], %s662_s5  ;;  %s153_s16 = scalar_lea.vmem (!%p144_p3), [#allocation5], %s295_s11 }
  0x3e   : > { %491 = dma.done.wait (%p621_p13), %s150_s15, 32  }
  0x3f   : > { %493 = vsyncadd (%p621_p13), %s150_s15, 4294967264  ;;  %s172_s17 = sld [smem:[#allocation3 + %s512_s21]]  ;;  %s298_s19 = sshll.u32 %s516_s22, 2  ;;  %v174_v0 = vld [vmem:[%s153_s16] sm:$0x3] }
  0x40   : > { %s173_s18 = sld [smem:[#allocation4 + %s512_s21]]  ;;  %s193_s26 = sadd.s32 %s512_s21, %s298_s19 }
  0x41   : > { %s171_s27 = scalar_lea.vmem [#allocation8], %s295_s11  ;;  %s299_s30 = sshll.u32 %s193_s26, 5 }
  0x42   : > { %s197_s4 = sshll.u32 %s171_s27, 4  ;;  %s195_s9 = scalar_lea.hbm %s720_s3, %s299_s30  ;;  %s198_s4 = int_to_ptr.vmem [resolvable:$true] %s197_s4 }
  0x43   : > { %s181_s13 = scalar_lea.sflag [#allocation7], %s662_s5  ;;  %s430_s14 = scalar_lea.vmem %s198_s4, 32 }
  0x44   : > { %p431_p13 = scmp.ne.s32.totalorder %s198_s4, %s430_s14  ;;  %s533_s21 = smov [#allocation8]  }
  0x45   : > { %v175_v1 = vstv %s172_s17  ;;  %s434_s22 = sshll.u32 %s533_s21, 4  ;;  %s435_s22 = int_to_ptr.vmem [resolvable:$false] %s434_s22 }
  0x46   : > { %v176_v2 = vsub.f32 %v174_v0, %v175_v1  ;;  %v177_v3 = vstv %s173_s18  ;;  %p432_p3 = pnand %p431_p13, %p625_p0  ;;  %s436_s11 = scalar_lea.vmem %s435_s22, 64 }
  0x47   : > { %p437_p6 = scmp.lt.s32.totalorder %s198_s4, %s435_s22  ;;  %p438_p7 = scmp.lt.s32.totalorder %s436_s11, %s430_s14 }
  0x48   : > { %v178_v4 = vmul.f32 %v177_v3, %v176_v2  ;;  %p433_p5 = pneg %p432_p3 }
  0x49   : > { %p439_p9 = por %p438_p7, %p437_p6 }
  0x4a   : > { %179 = vst [vmem:[%s171_s27] sm:$0x3] %v178_v4 }
  0x4b   : > { %p440_p10 = pnand %p439_p9, %p433_p5 }
  0x4d   : > { %443 = shalt.err (!%p440_p10)
}
  0x4e   : > { %s444_s15 = scalar_lea.hbm %s195_s9, 32  ;;  %s448_s17 = scalar_lea.hbm %s720_s3, 256 }
  0x4f   : > { %p445_p11 = scmp.ne.s32.totalorder %s195_s9, %s444_s15  ;;  %p449_p2 = scmp.lt.s32.totalorder %s195_s9, %s720_s3 }
  0x50   : > { %p450_p8 = scmp.lt.s32.totalorder %s448_s17, %s444_s15 }
  0x51   : > { %p446_p12 = pnand %p445_p11, %p625_p0 }
  0x52   : > { %p451_p4 = por %p450_p8, %p449_p2 }
  0x53   : > { %p447_p1 = pneg %p446_p12 }
  0x55   : > { %p452_p13 = pnand %p451_p4, %p447_p1 }
  0x57   : > { %455 = shalt.err (!%p452_p13)
}
  0x58   : > { %304 = dma.vmem_to_hbm [thread:$0]  (%p625_p0), %s198_s4, 32, %s195_s9, %s181_s13  }
  0x59 PF: > { %p315_p3 = scmp.ge.s32.totalorder %s528_s25, 2  ;;  %s209_s26 = sand.u32 1, %s500_s0  }
  0x5a   : > { %p727_p5 = scmp.ne.s32.totalorder %s725_s10, 0  ;;  %s210_s27 = scalar_lea.sflag [#allocation7], %s209_s26 }
  0x5c   : > { %p311_p6 = pnand %p315_p3, %p727_p5 }
  0x5e   : > { %p312_p7 = pneg %p311_p6 }
  0x60   : > { %495 = dma.done.wait (%p312_p7), %s210_s27, 32  }
  0x61   : > { %497 = vsyncadd (%p312_p7), %s210_s27, 4294967264  ;;  %s27_s25 = sadd.s32 1, %s528_s25   ;;  %s728_s0 = smov %s504_s1 }
  0x62   : > { %p24_p9 = scmp.ge.s32.totalorder %s27_s25, 10   ;;  %s729_s1 = smov %s508_s20 }
  0x63   : > { %s730_s20 = smov %s638_s12  ;;  %s731_s21 = smov %s520_s23 }
  0x64   : > { %s732_s22 = smov %s524_s24  ;;  %s733_s23 = smov %s736_s28 }
  0x65   : > { %s734_s24 = smov %s740_s29  ;;  %26 = sbr.rel (!%p24_p9) target bundleno = 23 (0x17), region = 69 }
  0x6a   :  { %215 = vsyncpa [#allocation6], 1 }
  0x6b   :  { %217 = vsyncpa [#allocation6 + $0x1], 1 }
  0x6c   :  { %218 = vsyncpa [#allocation7], 1 }
  0x6d   :  { %220 = vsyncpa [#allocation7 + $0x1], 1 }

</bundles_post_ra>
